<compile_context>
chip_gen: v7x
topology: tpu7x:2x2x1
jax: 0.10.0
libtpu: 0.0.40
codegen_flags: <defaults>
</compile_context>

<pallas_src>
import functools
import math

import jax
import jax.numpy as jnp
from jax.experimental import pallas as pl
from jax.experimental.pallas import tpu as pltpu

NEG_SLOPE = 0.2
MASK_VAL = -1e30   # finite sentinel: exp underflows to 0, never NaN/inf


# --------------------------------------------------------------------------
# Kernel 1: projection + per-head attention logits
# --------------------------------------------------------------------------
def _proj_kernel(x_ref, w_ref, attsrc_ref, attdst_ref, sel_ref,
                 xw_ref, asrc_ref, adst_ref):
    # x_ref:      [TM, F]      node-feature row tile
    # w_ref:      [F, H*C]
    # attsrc_ref: [1, H*C]     att_src flattened (head-major)
    # attdst_ref: [1, H*C]
    # sel_ref:    [H*C, H]     per-head column selector (1 iff column belongs to head)
    # xw_ref:     [TM, H*C]    bf16 projected features (out)
    # asrc_ref:   [TM, H]      f32 source logits (out)
    # adst_ref:   [TM, H]      f32 destination logits (out)
    xw = jnp.dot(x_ref[...].astype(jnp.bfloat16),
                 w_ref[...].astype(jnp.bfloat16),
                 preferred_element_type=jnp.float32)              # [TM, H*C] f32
    asrc_ref[...] = jnp.dot(xw * attsrc_ref[...], sel_ref[...],
                            preferred_element_type=jnp.float32)   # [TM, H]
    adst_ref[...] = jnp.dot(xw * attdst_ref[...], sel_ref[...],
                            preferred_element_type=jnp.float32)   # [TM, H]
    xw_ref[...] = xw.astype(jnp.bfloat16)


# --------------------------------------------------------------------------
# Kernel 2: tiled masked attention with online softmax (flash pattern)
# --------------------------------------------------------------------------
def _gat_attn_kernel(adst_ref, asrcT_ref, xw_ref, adj_ref, bias_ref, out_ref,
                     m_sc, l_sc, acc_sc, *, heads, out_ch):
    # adst_ref:  [TM, H]    f32   dst logits for this dst-row tile
    # asrcT_ref: [H, TK]    f32   src logits (transposed) for this src-col tile
    # xw_ref:    [TK, H*C]  bf16  projected src features
    # adj_ref:   [TM, TK]   int8  adj[dst, src] mask tile
    # bias_ref:  [1, H*C]   f32
    # out_ref:   [TM, H*C]  f32   (written once, on the last src tile)
    # scratch: m_sc [TM,H], l_sc [TM,H*C], acc_sc [TM,H*C]   (persist across src tiles)
    k = pl.program_id(1)

    @pl.when(k == 0)
    def _init():
        m_sc[...] = jnp.full_like(m_sc, MASK_VAL)
        l_sc[...] = jnp.zeros_like(l_sc)
        acc_sc[...] = jnp.zeros_like(acc_sc)

    adjf = adj_ref[...].astype(jnp.float32)        # [TM, TK]  (int8 in HBM -> 4x less DMA)
    a_dst = adst_ref[...]                          # [TM, H]
    a_srcT = asrcT_ref[...]                        # [H, TK]
    xw = xw_ref[...]                               # [TK, H*C] bf16

    for h in range(heads):                         # H is small; adj tile reused across heads
        lo = h * out_ch
        s = a_dst[:, h:h + 1] + a_srcT[h:h + 1, :]           # [TM, TK]
        s = jnp.where(s > 0, s, NEG_SLOPE * s)               # leaky_relu
        s = jnp.where(adjf > 0.0, s, MASK_VAL)               # mask folded into exp input

        m_prev = m_sc[:, h:h + 1]                            # [TM, 1]
        m_new = jnp.maximum(m_prev, jnp.max(s, axis=-1, keepdims=True))
        scale = jnp.exp(m_prev - m_new)                      # [TM, 1]
        p = jnp.exp(s - m_new)                               # [TM, TK] (unnormalized)

        m_sc[:, h:h + 1] = m_new
        l_sc[:, lo:lo + out_ch] = (scale * l_sc[:, lo:lo + out_ch]
                                   + jnp.sum(p, axis=-1, keepdims=True))
        acc_sc[:, lo:lo + out_ch] = (
            scale * acc_sc[:, lo:lo + out_ch]
            + jnp.dot(p.astype(jnp.bfloat16), xw[:, lo:lo + out_ch],
                      preferred_element_type=jnp.float32))

    @pl.when(k == pl.num_programs(1) - 1)
    def _finalize():
        # deferred softmax normalization + bias, single full-width store
        inv = pl.reciprocal(l_sc[...], approx=True)          # [TM, H*C] (per-head broadcast)
        out_ref[...] = acc_sc[...] * inv + bias_ref[...]


# --------------------------------------------------------------------------
# Wrapper
# --------------------------------------------------------------------------
def gatconv_forward(x, edge_index, W, att_src, att_dst, bias, *,
                    heads, out_ch, tm=128, tk=256):
    """GATConv forward. tm/tk: dst-row / src-col tile sizes.
    v5e: tk=128 is enough (4x128 MXU); v6e/v7x prefer tk multiples of 256.
    v7x: budget tiles against 64 MiB physical VMEM (defaults here are tiny)."""
    N, F = x.shape
    HC = heads * out_ch

    # ---- glue (XLA): self loops, dense int8 adjacency, padding -------------
    pad = math.lcm(tm, tk)
    Np = ((N + pad - 1) // pad) * pad

    src, dst = edge_index[0], edge_index[1]
    loops = jnp.arange(N)
    src = jnp.concatenate([src, loops])
    dst = jnp.concatenate([dst, loops])
    adj = jnp.zeros((Np, Np), jnp.int8).at[dst, src].set(1)     # adj[dst, src]

    x_p = jnp.zeros((Np, F), x.dtype).at[:N].set(x)

    # per-head column selector [H*C, H]
    sel = (jnp.repeat(jnp.arange(heads), out_ch)[:, None]
           == jnp.arange(heads)[None, :]).astype(jnp.float32)

    # ---- kernel 1: projection + logits --------------------------------------
    xw_bf16, a_src, a_dst = pl.pallas_call(
        _proj_kernel,
        out_shape=(jax.ShapeDtypeStruct((Np, HC), jnp.bfloat16),
                   jax.ShapeDtypeStruct((Np, heads), jnp.float32),
                   jax.ShapeDtypeStruct((Np, heads), jnp.float32)),
        grid_spec=pltpu.PrefetchScalarGridSpec(
            num_scalar_prefetch=0,
            grid=(Np // tm,),
            in_specs=[pl.BlockSpec((tm, F), lambda i: (i, 0)),
                      pl.BlockSpec((F, HC), lambda i: (0, 0)),
                      pl.BlockSpec((1, HC), lambda i: (0, 0)),
                      pl.BlockSpec((1, HC), lambda i: (0, 0)),
                      pl.BlockSpec((HC, heads), lambda i: (0, 0))],
            out_specs=[pl.BlockSpec((tm, HC), lambda i: (i, 0)),
                       pl.BlockSpec((tm, heads), lambda i: (i, 0)),
                       pl.BlockSpec((tm, heads), lambda i: (i, 0))]),
        compiler_params=pltpu.CompilerParams(
            dimension_semantics=("parallel",)),
    )(x_p, W, att_src.reshape(1, HC), att_dst.reshape(1, HC), sel)

    a_srcT = a_src.T                                            # [H, Np] (tiny transpose)

    # ---- kernel 2: tiled masked attention ------------------------------------
    out_p = pl.pallas_call(
        functools.partial(_gat_attn_kernel, heads=heads, out_ch=out_ch),
        out_shape=jax.ShapeDtypeStruct((Np, HC), jnp.float32),
        grid_spec=pltpu.PrefetchScalarGridSpec(
            num_scalar_prefetch=0,
            grid=(Np // tm, Np // tk),                          # (dst tiles, src tiles)
            in_specs=[pl.BlockSpec((tm, heads), lambda i, k: (i, 0)),
                      pl.BlockSpec((heads, tk), lambda i, k: (0, k)),
                      pl.BlockSpec((tk, HC), lambda i, k: (k, 0)),
                      pl.BlockSpec((tm, tk), lambda i, k: (i, k)),
                      pl.BlockSpec((1, HC), lambda i, k: (0, 0))],
            out_specs=pl.BlockSpec((tm, HC), lambda i, k: (i, 0)),
            scratch_shapes=[pltpu.VMEM((tm, heads), jnp.float32),   # running max
                            pltpu.VMEM((tm, HC), jnp.float32),      # running denom (per-head bcast)
                            pltpu.VMEM((tm, HC), jnp.float32)]),    # accumulator
        compiler_params=pltpu.CompilerParams(
            dimension_semantics=("parallel", "arbitrary"),
            vmem_limit_bytes=48 * 1024 * 1024),   # headroom for bigger tiles; < v7x 64 MiB
    )(a_dst, a_srcT, xw_bf16, adj, bias.reshape(1, HC))

    return out_p[:N]


# --------------------------------------------------------------------------
# Pure-JAX edge-list reference (PyG GATConv semantics, f32)
# --------------------------------------------------------------------------
def gatconv_reference(x, edge_index, W, att_src, att_dst, bias, *, heads, out_ch):
    N = x.shape[0]
    loops = jnp.arange(N)
    src = jnp.concatenate([edge_index[0], loops])
    dst = jnp.concatenate([edge_index[1], loops])
    xw = (x @ W).reshape(N, heads, out_ch)
    a_src = jnp.sum(xw * att_src[None], axis=-1)   # [N, H]
    a_dst = jnp.sum(xw * att_dst[None], axis=-1)   # [N, H]
    alpha = a_src[src] + a_dst[dst]                # [E, H]
    alpha = jnp.where(alpha > 0, alpha, NEG_SLOPE * alpha)
    amax = jax.ops.segment_max(alpha, dst, num_segments=N)
    alpha = jnp.exp(alpha - amax[dst])
    denom = jax.ops.segment_sum(alpha, dst, num_segments=N)
    alpha = alpha / denom[dst]
    msg = xw[src] * alpha[:, :, None]
    out = jax.ops.segment_sum(msg, dst, num_segments=N)
    return out.reshape(N, heads * out_ch) + bias
    # TODO(synk): attention dropout (att_drop) omitted -- module default 0.0 / eval.


if __name__ == "__main__":
    N, F_IN, HEADS, OUT_CH = 300, 8, 2, 8   # dim_in=8, dim_out=8, heads=2

    key = jax.random.PRNGKey(0)
    k_x, k_w, k_as, k_ad, k_b = jax.random.split(key, 5)

    x = jax.random.normal(k_x, (N, F_IN), dtype=jnp.float32)
    W = jax.random.normal(k_w, (F_IN, HEADS * OUT_CH), dtype=jnp.float32) * 0.3
    att_src = jax.random.normal(k_as, (HEADS, OUT_CH), dtype=jnp.float32) * 0.3
    att_dst = jax.random.normal(k_ad, (HEADS, OUT_CH), dtype=jnp.float32) * 0.3
    bias = jax.random.normal(k_b, (HEADS * OUT_CH,), dtype=jnp.float32) * 0.1

    # Deterministic edge list (ring + skip-2), no duplicates, no self loops.
    idx = jnp.arange(N)
    src_edges = jnp.concatenate([idx, idx])
    dst_edges = jnp.concatenate([(idx + 1) % N, (idx + 2) % N])
    edge_index = jnp.stack([src_edges, dst_edges])   # [2, 2N]

    out = gatconv_forward(x, edge_index, W, att_src, att_dst, bias,
                          heads=HEADS, out_ch=OUT_CH)
    out = jax.block_until_ready(out)

    ref = gatconv_reference(x, edge_index, W, att_src, att_dst, bias,
                            heads=HEADS, out_ch=OUT_CH)
    assert out.shape == (N, HEADS * OUT_CH)
    max_err = float(jnp.max(jnp.abs(out - ref)))
    # bf16 MXU operands + approx reciprocal -> relaxed tolerance vs f32 reference
    assert jnp.allclose(out, ref, atol=3e-2, rtol=3e-2), f"mismatch vs reference (max err {max_err})"

    print("KERNEL_OK")
</pallas_src>

<mosaic_0001>
module attributes {stable_mosaic.version = 11 : i64} {
  func.func @_proj_kernel(%arg0: i32, %arg1: memref<128x8xf32, #tpu.memory_space<vmem>>, %arg2: memref<8x16xf32, #tpu.memory_space<vmem>>, %arg3: memref<1x16xf32, #tpu.memory_space<vmem>>, %arg4: memref<1x16xf32, #tpu.memory_space<vmem>>, %arg5: memref<16x2xf32, #tpu.memory_space<vmem>>, %arg6: memref<128x16xbf16, #tpu.memory_space<vmem>>, %arg7: memref<128x2xf32, #tpu.memory_space<vmem>>, %arg8: memref<128x2xf32, #tpu.memory_space<vmem>>) attributes {dimension_semantics = [#tpu.dimension_semantics<parallel>], iteration_bounds = array<i64: 4>, scalar_prefetch = 0 : i64, scratch_operands = 0 : i64, tpu.core_type = #tpu.core_type<tc>, window_params = [{transform_indices = @transform_0, window_bounds = array<i64: 128, 8>}, {pipeline_mode = #tpu.pipeline_mode<synchronous>, transform_indices = @transform_1, window_bounds = array<i64: 8, 16>}, {pipeline_mode = #tpu.pipeline_mode<synchronous>, transform_indices = @transform_2, window_bounds = array<i64: 1, 16>}, {pipeline_mode = #tpu.pipeline_mode<synchronous>, transform_indices = @transform_3, window_bounds = array<i64: 1, 16>}, {pipeline_mode = #tpu.pipeline_mode<synchronous>, transform_indices = @transform_4, window_bounds = array<i64: 16, 2>}, {transform_indices = @transform_5, window_bounds = array<i64: 128, 16>}, {transform_indices = @transform_6, window_bounds = array<i64: 128, 2>}, {transform_indices = @transform_7, window_bounds = array<i64: 128, 2>}]} {
    %c0 = arith.constant 0 : index
    %c0_0 = arith.constant 0 : index
    %0 = vector.load %arg1[%c0, %c0_0] : memref<128x8xf32, #tpu.memory_space<vmem>>, vector<128x8xf32>
    %1 = arith.truncf %0 : vector<128x8xf32> to vector<128x8xbf16>
    %c0_1 = arith.constant 0 : index
    %c0_2 = arith.constant 0 : index
    %2 = vector.load %arg2[%c0_1, %c0_2] : memref<8x16xf32, #tpu.memory_space<vmem>>, vector<8x16xf32>
    %3 = arith.truncf %2 : vector<8x16xf32> to vector<8x16xbf16>
    %cst = arith.constant dense<0.000000e+00> : vector<128x16xf32>
    %4 = tpu.matmul %1, %3, %cst {dimension_numbers = #tpu.dot_dimension_numbers<[1], [0], [0], [1], [0, 0, 1, 1], [], []>} : vector<128x8xbf16>, vector<8x16xbf16>, vector<128x16xf32> -> vector<128x16xf32>
    %c0_3 = arith.constant 0 : index
    %c0_4 = arith.constant 0 : index
    %5 = vector.load %arg3[%c0_3, %c0_4] : memref<1x16xf32, #tpu.memory_space<vmem>>, vector<1x16xf32>
    %6 = vector.broadcast %5 : vector<1x16xf32> to vector<128x16xf32>
    %7 = arith.mulf %4, %6 : vector<128x16xf32>
    %c0_5 = arith.constant 0 : index
    %c0_6 = arith.constant 0 : index
    %8 = vector.load %arg5[%c0_5, %c0_6] : memref<16x2xf32, #tpu.memory_space<vmem>>, vector<16x2xf32>
    %cst_7 = arith.constant dense<0.000000e+00> : vector<128x2xf32>
    %9 = tpu.matmul %7, %8, %cst_7 {dimension_numbers = #tpu.dot_dimension_numbers<[1], [0], [0], [1], [0, 0, 1, 1], [], []>} : vector<128x16xf32>, vector<16x2xf32>, vector<128x2xf32> -> vector<128x2xf32>
    %c0_8 = arith.constant 0 : index
    %c0_9 = arith.constant 0 : index
    %10 = vector.load %arg7[%c0_8, %c0_9] : memref<128x2xf32, #tpu.memory_space<vmem>>, vector<128x2xf32>
    tpu.vector_store %arg7[%c0_8, %c0_9], %9 {strides = array<i32>} : memref<128x2xf32, #tpu.memory_space<vmem>>, vector<128x2xf32>,
    %c0_10 = arith.constant 0 : index
    %c0_11 = arith.constant 0 : index
    %11 = vector.load %arg4[%c0_10, %c0_11] : memref<1x16xf32, #tpu.memory_space<vmem>>, vector<1x16xf32>
    %12 = vector.broadcast %11 : vector<1x16xf32> to vector<128x16xf32>
    %13 = arith.mulf %4, %12 : vector<128x16xf32>
    %c0_12 = arith.constant 0 : index
    %c0_13 = arith.constant 0 : index
    %14 = vector.load %arg5[%c0_12, %c0_13] : memref<16x2xf32, #tpu.memory_space<vmem>>, vector<16x2xf32>
    %cst_14 = arith.constant dense<0.000000e+00> : vector<128x2xf32>
    %15 = tpu.matmul %13, %14, %cst_14 {dimension_numbers = #tpu.dot_dimension_numbers<[1], [0], [0], [1], [0, 0, 1, 1], [], []>} : vector<128x16xf32>, vector<16x2xf32>, vector<128x2xf32> -> vector<128x2xf32>
    %c0_15 = arith.constant 0 : index
    %c0_16 = arith.constant 0 : index
    %16 = vector.load %arg8[%c0_15, %c0_16] : memref<128x2xf32, #tpu.memory_space<vmem>>, vector<128x2xf32>
    tpu.vector_store %arg8[%c0_15, %c0_16], %15 {strides = array<i32>} : memref<128x2xf32, #tpu.memory_space<vmem>>, vector<128x2xf32>,
    %17 = arith.truncf %4 : vector<128x16xf32> to vector<128x16xbf16>
    %c0_17 = arith.constant 0 : index
    %c0_18 = arith.constant 0 : index
    %18 = vector.load %arg6[%c0_17, %c0_18] : memref<128x16xbf16, #tpu.memory_space<vmem>>, vector<128x16xbf16>
    tpu.vector_store %arg6[%c0_17, %c0_18], %17 {strides = array<i32>} : memref<128x16xbf16, #tpu.memory_space<vmem>>, vector<128x16xbf16>,
    return
  }
  func.func @transform_0(%arg0: i32) -> (i32, i32) {
    %c0_i32 = arith.constant 0 : i32
    %c0_i32_0 = arith.constant 0 : i32
    return %arg0, %c0_i32 : i32, i32
  }
  func.func @transform_1(%arg0: i32) -> (i32, i32) {
    %c0_i32 = arith.constant 0 : i32
    %c0_i32_0 = arith.constant 0 : i32
    %c0_i32_1 = arith.constant 0 : i32
    return %c0_i32, %c0_i32_0 : i32, i32
  }
  func.func @transform_2(%arg0: i32) -> (i32, i32) {
    %c0_i32 = arith.constant 0 : i32
    %c0_i32_0 = arith.constant 0 : i32
    %c0_i32_1 = arith.constant 0 : i32
    return %c0_i32, %c0_i32_0 : i32, i32
  }
  func.func @transform_3(%arg0: i32) -> (i32, i32) {
    %c0_i32 = arith.constant 0 : i32
    %c0_i32_0 = arith.constant 0 : i32
    %c0_i32_1 = arith.constant 0 : i32
    return %c0_i32, %c0_i32_0 : i32, i32
  }
  func.func @transform_4(%arg0: i32) -> (i32, i32) {
    %c0_i32 = arith.constant 0 : i32
    %c0_i32_0 = arith.constant 0 : i32
    %c0_i32_1 = arith.constant 0 : i32
    return %c0_i32, %c0_i32_0 : i32, i32
  }
  func.func @transform_5(%arg0: i32) -> (i32, i32) {
    %c0_i32 = arith.constant 0 : i32
    %c0_i32_0 = arith.constant 0 : i32
    return %arg0, %c0_i32 : i32, i32
  }
  func.func @transform_6(%arg0: i32) -> (i32, i32) {
    %c0_i32 = arith.constant 0 : i32
    %c0_i32_0 = arith.constant 0 : i32
    return %arg0, %c0_i32 : i32, i32
  }
  func.func @transform_7(%arg0: i32) -> (i32, i32) {
    %c0_i32 = arith.constant 0 : i32
    %c0_i32_0 = arith.constant 0 : i32
    return %arg0, %c0_i32 : i32, i32
  }
}

</mosaic_0001>

<bundles_post_ra>
// kernel: tpu_custom_call.1
= control target key start
LH: loop header
LB: loop body
LE: loop exit
PB: predicated region body
PF: predicated region fallthrough
CT: control target
= control target key end

     0   :  { %s1413_s24 = smov 0   ;;  %s1668_s0 = inlined_call_operand.vmem [shape: f32[512,8], index: 0, kind: input, shape index: {}]   ;;  %s1669_s1 = inlined_call_operand.vmem [shape: f32[8,16], index: 1, kind: input, shape index: {}]   ;;  %s1670_s2 = inlined_call_operand.vmem [shape: f32[1,16], index: 2, kind: input, shape index: {}]   ;;  %s1671_s3 = inlined_call_operand.vmem [shape: f32[1,16], index: 3, kind: input, shape index: {}]   ;;  %s1672_s4 = inlined_call_operand.vmem [shape: f32[16,2], index: 4, kind: input, shape index: {}]   ;;  %s1673_s5 = inlined_call_operand.vmem [shape: bf16[512,16], index: 5, kind: output, shape index: {0}]   ;;  %s1674_s6 = inlined_call_operand.vmem [shape: f32[512,2], index: 6, kind: output, shape index: {1}]   ;;  %s1675_s7 = inlined_call_operand.vmem [shape: f32[512,2], index: 7, kind: output, shape index: {2}]  }
   0x1 LB: > { %s1137_s25 = sadd.s32 4294967295, %s1371_s24   ;;  %p1141_p0 = scmp.ge.s32.totalorder %s1371_s24, 1  ;;  %s1371_s24 = sphi %s1413_s24, %s18_s24  }
   0x2   : > { %p243_p1 = scmp.lt.s32.totalorder %s1371_s24, 5 }
   0x4   : > { %p244_p2 = pnand %p1141_p0, %p243_p1 }
   0x5   : > { %v334_v0 = vld [vmem:[%s1669_s1] sm:$0xff] (!%p244_p2)  ;;  %vm361_vm0 = vcmask (!%p244_p2), 1043456   ;;  %s1142_s28 = sshll.u32 (!%p244_p2), %s1137_s25, 4  ;;  %v486_v2 = vld [vmem:[%s1672_s4 + $0x8] sm:$0xff] (!%p244_p2)  ;;  %vm336_vm1 = vcmask (!%p244_p2), 64512   ;;  %vm996_vm2 = vcmask (!%p244_p2), 125952  }
   0x6   : > { %247 = sbr.rel (%p244_p2) target bundleno = 479 (0x1df), region = 40  ;;  %v485_v1 = vld [vmem:[%s1672_s4] sm:$0xff] (!%p244_p2)  ;;  %v335_v3 = vpack.c.bf16 (!%p244_p2), %v334_v0, %v334_v0  ;;  %p286_p3 = scmp.lt.s32.totalorder (!%p244_p2), %s1142_s28, 63  ;;  %vm487_vm3 = vcmask (!%p244_p2), 130048   ;;  %vm681_vm4 = vcmask (!%p244_p2), 15360  }
   0x7   : > { %v1345_v4 = vpack.c.bf16 (!%p244_p2), %v486_v2, %v485_v1  ;;  %v1469_v30 = vld [vmem:[%s1670_s2] ss:$0 sm:$0xff] (!%p244_p2) }
   0x8   : > { %1355 = vmatprep.subr.msk.bf16.mxu0 (!%p244_p2), %vm361_vm0, %v335_v3  ;;  %v363_v5 = vsel (!%p244_p2), %vm361_vm0, %v335_v3, 0  ;;  %1356 = vmatprep.subr.msk.bf16.mxu1 (!%p244_p2), %vm361_vm0, %v335_v3  ;;  %v1474_v31 = vld [vmem:[%s1671_s3] ss:$0 sm:$0xff] (!%p244_p2) }
   0x9   : > { %1272 = vmatpush3.bf16.msra.mxu0 (!%p244_p2), %v363_v5  ;;  %1354 = vmatpush3.bf16.msra.mxu1 (!%p244_p2), %v363_v5 }
   0xa   : > { %1346 = vmatprep.subr.bf16.mxu1 (!%p244_p2), %v1345_v4  ;;  %1350 = vmatprep.subr.bf16.mxu0 (!%p244_p2), %v1345_v4 }
   0xd   : > { %s1677_s28 = smov (!%p286_p3, %s1142_s28), 63 }
   0xe   : > { %s1433_s10 = sshll.u32 %s1677_s28, 3  ;;  %s1145_s14 = sshll.u32 %s1677_s28, 2 }
   0xf   : > { %s1439_s13 = scalar_lea.vmem %s1668_s0, %s1433_s10  ;;  %s1479_s21 = scalar_lea.vmem %s1673_s5, %s1145_s14 }
  0x10   : > { %v310_v6 = vld [vmem:[%s1439_s13] sm:$0xff]  ;;  %v311_v7 = vld [vmem:[%s1439_s13 + $0x8] sm:$0xff]  ;;  %v312_v8 = vld [vmem:[%s1439_s13 + $0x10] sm:$0xff]  ;;  %s1593_s25 = scalar_lea.vmem %s1674_s6, %s1433_s10  ;;  %s1599_s28 = scalar_lea.vmem %s1675_s7, %s1433_s10 }
  0x11   : > { %v326_v9 = vpack.c.bf16 %v311_v7, %v310_v6  ;;  %v313_v10 = vld [vmem:[%s1439_s13 + $0x18] sm:$0xff]  ;;  %v314_v11 = vld [vmem:[%s1439_s13 + $0x20] sm:$0xff]  ;;  %v315_v12 = vld [vmem:[%s1439_s13 + $0x28] sm:$0xff] }
  0x12   : > { %v327_v13 = vpack.c.bf16 %v313_v10, %v312_v8  ;;  %v328_v14 = vpack.c.bf16 %v315_v12, %v314_v11  ;;  %v318_v15 = vld [vmem:[%s1439_s13 + $0x40] sm:$0xff]  ;;  %v319_v16 = vld [vmem:[%s1439_s13 + $0x48] sm:$0xff]  ;;  %v320_v17 = vld [vmem:[%s1439_s13 + $0x50] sm:$0xff] }
  0x13   : > { %1273 = vmatprep.mubr.msk.bf16.mxu0 %vm336_vm1, %v326_v9  ;;  %v321_v18 = vld [vmem:[%s1439_s13 + $0x58] sm:$0xff]  ;;  %v330_v19 = vpack.c.bf16 %v319_v16, %v318_v15  ;;  %v322_v21 = vld [vmem:[%s1439_s13 + $0x60] sm:$0xff]  ;;  %v323_v22 = vld [vmem:[%s1439_s13 + $0x68] sm:$0xff] }
  0x14   : > { %1274 = vmatmul.mubr.msk.bf16.vlgmr.msra.gmra.mrb[0].mxu0 %vm336_vm1, %v327_v13  ;;  %v331_v20 = vpack.c.bf16 %v321_v18, %v320_v17  ;;  %v316_v23 = vld [vmem:[%s1439_s13 + $0x30] sm:$0xff]  ;;  %v317_v24 = vld [vmem:[%s1439_s13 + $0x38] sm:$0xff]  ;;  %v332_v25 = vpack.c.bf16 %v323_v22, %v322_v21 }
  0x15   : > { %1277 = vmatprep.mubr.msk.bf16.mxu0 %vm336_vm1, %v328_v14  ;;  %1352 = vmatpush3.bf16.msra.mxu0 %v1345_v4  ;;  %v329_v26 = vpack.c.bf16 %v317_v24, %v316_v23  ;;  %v324_v27 = vld [vmem:[%s1439_s13 + $0x70] sm:$0xff]  ;;  %v325_v28 = vld [vmem:[%s1439_s13 + $0x78] sm:$0xff] }
  0x16   : > { %1281 = vmatprep.mubr.msk.bf16.mxu1 %vm336_vm1, %v330_v19  ;;  %v333_v29 = vpack.c.bf16 %v325_v28, %v324_v27 }
  0x17   : > { %1282 = vmatmul.mubr.msk.bf16.vlgmr.msra.gmra.mrb[0].mxu1 %vm336_vm1, %v331_v20 }
  0x18   : > { %1285 = vmatprep.mubr.msk.bf16.mxu1 %vm336_vm1, %v332_v25  ;;  %1348 = vmatpush3.bf16.msra.mxu1 %v1345_v4 }
  0x1c   : > { %1278 = vmatmul.mubr.msk.bf16.gmra.mrb[4].mxu0 %vm336_vm1, %v329_v26 }
  0x1f   : > { %1286 = vmatmul.mubr.msk.bf16.gmra.mrb[4].mxu1 %vm336_vm1, %v333_v29 }
  0xe7   : > { %v1275_v32 = vpop.f32.mrb[0].mxu0 }
  0xe8   : > { %v1212_v33 = vpack.c.bf16 %v1275_v32, %v1275_v32  ;;  %v399_v34 = vpop.f32.mrb[1].mxu0  ;;  %v471_v46 = vmul.f32 %v1275_v32, %v1469_v30  ;;  %v707_v47 = vmul.f32 %v1275_v32, %v1474_v31 }
  0xe9   : > { %v469_v35 = vmul.f32 %v1469_v30, %v399_v34  ;;  %v705_v36 = vmul.f32 %v1474_v31, %v399_v34  ;;  %v1210_v37 = vpack.c.bf16 %v399_v34, %v399_v34  ;;  %v1276_v38 = vpop.f32.mrb[2].mxu0 }
  0xea   : > { %999 = vst.msk [vmem:[%s1479_s21 + $0x8] sm:$0xf] %vm996_vm2, %v1212_v33  ;;  %v1213_v39 = vpack.c.bf16 %v1276_v38, %v1276_v38  ;;  %v402_v40 = vpop.f32.mrb[3].mxu0  ;;  %v1485_v41 = vpop.f32.mrb[0].mxu1  ;;  %v472_v53 = vmul.f32 %v1276_v38, %v1469_v30  ;;  %v708_v54 = vmul.f32 %v1276_v38, %v1474_v31 }
  0xeb   : > { %997 = vst.msk [vmem:[%s1479_s21] sm:$0xf] %vm996_vm2, %v1210_v37  ;;  %v470_v42 = vmul.f32 %v1469_v30, %v402_v40  ;;  %v706_v43 = vmul.f32 %v1474_v31, %v402_v40  ;;  %v1211_v44 = vpack.c.bf16 %v402_v40, %v402_v40  ;;  %1293 = vmatprep.mubr.msk.f32.mxu1 %vm487_vm3, %v469_v35  ;;  %v431_v45 = vpop.f32.mrb[1].mxu1 }
  0xec   : > { %1321 = vmatprep.mubr.msk.f32.mxu0 %vm487_vm3, %v705_v36  ;;  %1000 = vst.msk [vmem:[%s1479_s21 + $0xc] sm:$0xf] %vm996_vm2, %v1213_v39  ;;  %v1220_v48 = vpack.c.bf16 %v1485_v41, %v1485_v41  ;;  %v1499_v49 = vpop.f32.mrb[2].mxu1  ;;  %v1218_v50 = vpack.c.bf16 %v431_v45, %v431_v45  ;;  %v477_v12 = vmul.f32 %v1469_v30, %v431_v45 }
  0xed   : > { %998 = vst.msk [vmem:[%s1479_s21 + $0x4] sm:$0xf] %vm996_vm2, %v1211_v44  ;;  %1294 = vmatmul.mubr.msk.f32.vlgmr.msra.gmra.mrb[8].mxu1 %vm487_vm3, %v470_v42  ;;  %1322 = vmatmul.mubr.msk.f32.vlgmr.msra.gmra.mrb[8].mxu0 %vm487_vm3, %v706_v43  ;;  %v434_v51 = vpop.f32.mrb[3].mxu1  ;;  %v1221_v52 = vpack.c.bf16 %v1499_v49, %v1499_v49  ;;  %v713_v13 = vmul.f32 %v1474_v31, %v431_v45 }
  0xee   : > { %1296 = vmatprep.mubr.msk.f32.mxu1 %vm487_vm3, %v471_v46  ;;  %1324 = vmatprep.mubr.msk.f32.mxu0 %vm487_vm3, %v707_v47  ;;  %1007 = vst.msk [vmem:[%s1479_s21 + $0x28] sm:$0xf] %vm996_vm2, %v1220_v48  ;;  %1005 = vst.msk [vmem:[%s1479_s21 + $0x20] sm:$0xf] %vm996_vm2, %v1218_v50  ;;  %v1219_v56 = vpack.c.bf16 %v434_v51, %v434_v51  ;;  %v478_v18 = vmul.f32 %v1469_v30, %v434_v51 }
  0xef   : > { %v1279_v55 = vpop.f32.mrb[4].mxu0  ;;  %1008 = vst.msk [vmem:[%s1479_s21 + $0x2c] sm:$0xf] %vm996_vm2, %v1221_v52  ;;  %v714_v19 = vmul.f32 %v1474_v31, %v434_v51  ;;  %v479_v20 = vmul.f32 %v1485_v41, %v1469_v30  ;;  %v715_v21 = vmul.f32 %v1485_v41, %v1474_v31  ;;  %v480_v24 = vmul.f32 %v1499_v49, %v1469_v30 }
  0xf0   : > { %v1216_v57 = vpack.c.bf16 %v1279_v55, %v1279_v55  ;;  %v415_v58 = vpop.f32.mrb[5].mxu0  ;;  %1006 = vst.msk [vmem:[%s1479_s21 + $0x24] sm:$0xf] %vm996_vm2, %v1219_v56  ;;  %v475_v6 = vmul.f32 %v1279_v55, %v1469_v30  ;;  %v711_v7 = vmul.f32 %v1279_v55, %v1474_v31  ;;  %v716_v25 = vmul.f32 %v1499_v49, %v1474_v31 }
  0xf1   : > { %v473_v59 = vmul.f32 %v1469_v30, %v415_v58  ;;  %v709_v60 = vmul.f32 %v1474_v31, %v415_v58  ;;  %v1214_v61 = vpack.c.bf16 %v415_v58, %v415_v58  ;;  %v1280_v62 = vpop.f32.mrb[6].mxu0  ;;  %1297 = vmatmul.mubr.msk.f32.gmra.mrb[10].mxu1 %vm487_vm3, %v472_v53  ;;  %1325 = vmatmul.mubr.msk.f32.gmra.mrb[10].mxu0 %vm487_vm3, %v708_v54 }
  0xf2   : > { %1003 = vst.msk [vmem:[%s1479_s21 + $0x18] sm:$0xf] %vm996_vm2, %v1216_v57  ;;  %v1217_v63 = vpack.c.bf16 %v1280_v62, %v1280_v62  ;;  %v418_v0 = vpop.f32.mrb[7].mxu0  ;;  %v1287_v1 = vpop.f32.mrb[4].mxu1  ;;  %v476_v15 = vmul.f32 %v1280_v62, %v1469_v30  ;;  %v712_v16 = vmul.f32 %v1280_v62, %v1474_v31 }
  0xf3   : > { %1001 = vst.msk [vmem:[%s1479_s21 + $0x10] sm:$0xf] %vm996_vm2, %v1214_v61  ;;  %v474_v2 = vmul.f32 %v1469_v30, %v418_v0  ;;  %v710_v3 = vmul.f32 %v1474_v31, %v418_v0  ;;  %v1215_v4 = vpack.c.bf16 %v418_v0, %v418_v0  ;;  %1299 = vmatprep.mubr.msk.f32.mxu1 %vm487_vm3, %v473_v59  ;;  %v447_v5 = vpop.f32.mrb[5].mxu1 }
  0xf4   : > { %1327 = vmatprep.mubr.msk.f32.mxu0 %vm487_vm3, %v709_v60  ;;  %1004 = vst.msk [vmem:[%s1479_s21 + $0x1c] sm:$0xf] %vm996_vm2, %v1217_v63  ;;  %v1224_v8 = vpack.c.bf16 %v1287_v1, %v1287_v1  ;;  %v1288_v9 = vpop.f32.mrb[6].mxu1  ;;  %v1222_v10 = vpack.c.bf16 %v447_v5, %v447_v5  ;;  %v481_v22 = vmul.f32 %v1469_v30, %v447_v5 }
  0xf5   : > { %1002 = vst.msk [vmem:[%s1479_s21 + $0x14] sm:$0xf] %vm996_vm2, %v1215_v4  ;;  %1300 = vmatmul.mubr.msk.f32.gmra.mrb[12].mxu1 %vm487_vm3, %v474_v2  ;;  %1328 = vmatmul.mubr.msk.f32.gmra.mrb[12].mxu0 %vm487_vm3, %v710_v3  ;;  %v450_v11 = vpop.f32.mrb[7].mxu1  ;;  %v1225_v14 = vpack.c.bf16 %v1288_v9, %v1288_v9  ;;  %v717_v23 = vmul.f32 %v1474_v31, %v447_v5 }
  0xf6   : > { %1302 = vmatprep.mubr.msk.f32.mxu1 %vm487_vm3, %v475_v6  ;;  %1330 = vmatprep.mubr.msk.f32.mxu0 %vm487_vm3, %v711_v7  ;;  %1011 = vst.msk [vmem:[%s1479_s21 + $0x38] sm:$0xf] %vm996_vm2, %v1224_v8  ;;  %1009 = vst.msk [vmem:[%s1479_s21 + $0x30] sm:$0xf] %vm996_vm2, %v1222_v10  ;;  %v1223_v17 = vpack.c.bf16 %v450_v11, %v450_v11  ;;  %v482_v26 = vmul.f32 %v1469_v30, %v450_v11 }
  0xf7   : > { %1012 = vst.msk [vmem:[%s1479_s21 + $0x3c] sm:$0xf] %vm996_vm2, %v1225_v14  ;;  %v718_v27 = vmul.f32 %v1474_v31, %v450_v11  ;;  %v483_v28 = vmul.f32 %v1287_v1, %v1469_v30  ;;  %v719_v29 = vmul.f32 %v1287_v1, %v1474_v31  ;;  %v484_v32 = vmul.f32 %v1288_v9, %v1469_v30 }
  0xf8   : > { %1010 = vst.msk [vmem:[%s1479_s21 + $0x34] sm:$0xf] %vm996_vm2, %v1223_v17  ;;  %v720_v33 = vmul.f32 %v1288_v9, %v1474_v31 }
  0xf9   : > { %1303 = vmatmul.mubr.msk.f32.gmra.mrb[14].mxu1 %vm487_vm3, %v476_v15  ;;  %1331 = vmatmul.mubr.msk.f32.gmra.mrb[14].mxu0 %vm487_vm3, %v712_v16 }
  0xfa   : > { %1305 = vmatprep.mubr.msk.f32.mxu1 %vm487_vm3, %v477_v12  ;;  %1333 = vmatprep.mubr.msk.f32.mxu0 %vm487_vm3, %v713_v13 }
  0xfd   : > { %1306 = vmatmul.mubr.msk.f32.gmra.mrb[16].mxu1 %vm487_vm3, %v478_v18  ;;  %1334 = vmatmul.mubr.msk.f32.gmra.mrb[16].mxu0 %vm487_vm3, %v714_v19 }
  0xfe   : > { %1308 = vmatprep.mubr.msk.f32.mxu1 %vm487_vm3, %v479_v20  ;;  %1336 = vmatprep.mubr.msk.f32.mxu0 %vm487_vm3, %v715_v21 }
 0x101   : > { %1309 = vmatmul.mubr.msk.f32.gmra.mrb[18].mxu1 %vm487_vm3, %v480_v24  ;;  %1337 = vmatmul.mubr.msk.f32.gmra.mrb[18].mxu0 %vm487_vm3, %v716_v25 }
 0x102   : > { %1311 = vmatprep.mubr.msk.f32.mxu1 %vm487_vm3, %v481_v22  ;;  %1339 = vmatprep.mubr.msk.f32.mxu0 %vm487_vm3, %v717_v23 }
 0x105   : > { %1312 = vmatmul.mubr.msk.f32.gmra.mrb[20].mxu1 %vm487_vm3, %v482_v26  ;;  %1340 = vmatmul.mubr.msk.f32.gmra.mrb[20].mxu0 %vm487_vm3, %v718_v27 }
 0x106   : > { %1314 = vmatprep.mubr.msk.f32.mxu1 %vm487_vm3, %v483_v28  ;;  %1342 = vmatprep.mubr.msk.f32.mxu0 %vm487_vm3, %v719_v29 }
 0x109   : > { %1315 = vmatmul.mubr.msk.f32.gmra.mrb[22].mxu1 %vm487_vm3, %v484_v32  ;;  %1343 = vmatmul.mubr.msk.f32.gmra.mrb[22].mxu0 %vm487_vm3, %v720_v33 }
 0x1c0   : > { %v1295_v30 = vpop.f32.mrb[8].mxu1  ;;  %v1323_v31 = vpop.f32.mrb[8].mxu0 }
 0x1c1   : > { %683 = vst.msk [vmem:[%s1593_s25 + $0x8] sm:$0xff] %vm681_vm4, %v1295_v30  ;;  %917 = vst.msk [vmem:[%s1599_s28 + $0x8] sm:$0xff] %vm681_vm4, %v1323_v31  ;;  %v602_v34 = vpop.f32.mrb[9].mxu1  ;;  %v837_v35 = vpop.f32.mrb[9].mxu0 }
 0x1c2   : > { %682 = vst.msk [vmem:[%s1593_s25] sm:$0xff] %vm681_vm4, %v602_v34  ;;  %916 = vst.msk [vmem:[%s1599_s28] sm:$0xff] %vm681_vm4, %v837_v35 }
 0x1c4   : > { %v1298_v36 = vpop.f32.mrb[10].mxu1  ;;  %v1326_v37 = vpop.f32.mrb[10].mxu0 }
 0x1c5   : > { %685 = vst.msk [vmem:[%s1593_s25 + $0x18] sm:$0xff] %vm681_vm4, %v1298_v36  ;;  %919 = vst.msk [vmem:[%s1599_s28 + $0x18] sm:$0xff] %vm681_vm4, %v1326_v37  ;;  %v612_v38 = vpop.f32.mrb[11].mxu1  ;;  %v847_v39 = vpop.f32.mrb[11].mxu0 }
 0x1c6   : > { %684 = vst.msk [vmem:[%s1593_s25 + $0x10] sm:$0xff] %vm681_vm4, %v612_v38  ;;  %918 = vst.msk [vmem:[%s1599_s28 + $0x10] sm:$0xff] %vm681_vm4, %v847_v39 }
 0x1c8   : > { %v1301_v40 = vpop.f32.mrb[12].mxu1  ;;  %v1329_v41 = vpop.f32.mrb[12].mxu0 }
 0x1c9   : > { %687 = vst.msk [vmem:[%s1593_s25 + $0x28] sm:$0xff] %vm681_vm4, %v1301_v40  ;;  %921 = vst.msk [vmem:[%s1599_s28 + $0x28] sm:$0xff] %vm681_vm4, %v1329_v41  ;;  %v622_v42 = vpop.f32.mrb[13].mxu1  ;;  %v857_v43 = vpop.f32.mrb[13].mxu0 }
 0x1ca   : > { %686 = vst.msk [vmem:[%s1593_s25 + $0x20] sm:$0xff] %vm681_vm4, %v622_v42  ;;  %920 = vst.msk [vmem:[%s1599_s28 + $0x20] sm:$0xff] %vm681_vm4, %v857_v43 }
 0x1cc   : > { %v1304_v44 = vpop.f32.mrb[14].mxu1  ;;  %v1332_v45 = vpop.f32.mrb[14].mxu0 }
 0x1cd   : > { %689 = vst.msk [vmem:[%s1593_s25 + $0x38] sm:$0xff] %vm681_vm4, %v1304_v44  ;;  %923 = vst.msk [vmem:[%s1599_s28 + $0x38] sm:$0xff] %vm681_vm4, %v1332_v45  ;;  %v632_v46 = vpop.f32.mrb[15].mxu1  ;;  %v867_v47 = vpop.f32.mrb[15].mxu0 }
 0x1ce   : > { %688 = vst.msk [vmem:[%s1593_s25 + $0x30] sm:$0xff] %vm681_vm4, %v632_v46  ;;  %922 = vst.msk [vmem:[%s1599_s28 + $0x30] sm:$0xff] %vm681_vm4, %v867_v47 }
 0x1d0   : > { %v1307_v48 = vpop.f32.mrb[16].mxu1  ;;  %v1335_v49 = vpop.f32.mrb[16].mxu0 }
 0x1d1   : > { %691 = vst.msk [vmem:[%s1593_s25 + $0x48] sm:$0xff] %vm681_vm4, %v1307_v48  ;;  %925 = vst.msk [vmem:[%s1599_s28 + $0x48] sm:$0xff] %vm681_vm4, %v1335_v49  ;;  %v642_v50 = vpop.f32.mrb[17].mxu1  ;;  %v877_v51 = vpop.f32.mrb[17].mxu0 }
 0x1d2   : > { %690 = vst.msk [vmem:[%s1593_s25 + $0x40] sm:$0xff] %vm681_vm4, %v642_v50  ;;  %924 = vst.msk [vmem:[%s1599_s28 + $0x40] sm:$0xff] %vm681_vm4, %v877_v51 }
 0x1d4   : > { %v1310_v52 = vpop.f32.mrb[18].mxu1  ;;  %v1338_v53 = vpop.f32.mrb[18].mxu0 }
 0x1d5   : > { %693 = vst.msk [vmem:[%s1593_s25 + $0x58] sm:$0xff] %vm681_vm4, %v1310_v52  ;;  %927 = vst.msk [vmem:[%s1599_s28 + $0x58] sm:$0xff] %vm681_vm4, %v1338_v53  ;;  %v652_v54 = vpop.f32.mrb[19].mxu1  ;;  %v887_v55 = vpop.f32.mrb[19].mxu0 }
 0x1d6   : > { %692 = vst.msk [vmem:[%s1593_s25 + $0x50] sm:$0xff] %vm681_vm4, %v652_v54  ;;  %926 = vst.msk [vmem:[%s1599_s28 + $0x50] sm:$0xff] %vm681_vm4, %v887_v55 }
 0x1d8   : > { %v1313_v56 = vpop.f32.mrb[20].mxu1  ;;  %v1341_v57 = vpop.f32.mrb[20].mxu0 }
 0x1d9   : > { %695 = vst.msk [vmem:[%s1593_s25 + $0x68] sm:$0xff] %vm681_vm4, %v1313_v56  ;;  %929 = vst.msk [vmem:[%s1599_s28 + $0x68] sm:$0xff] %vm681_vm4, %v1341_v57  ;;  %v662_v58 = vpop.f32.mrb[21].mxu1  ;;  %v897_v59 = vpop.f32.mrb[21].mxu0 }
 0x1da   : > { %694 = vst.msk [vmem:[%s1593_s25 + $0x60] sm:$0xff] %vm681_vm4, %v662_v58  ;;  %928 = vst.msk [vmem:[%s1599_s28 + $0x60] sm:$0xff] %vm681_vm4, %v897_v59 }
 0x1dc   : > { %v1316_v60 = vpop.f32.mrb[22].mxu1  ;;  %v1344_v61 = vpop.f32.mrb[22].mxu0 }
 0x1dd   : > { %697 = vst.msk [vmem:[%s1593_s25 + $0x78] sm:$0xff] %vm681_vm4, %v1316_v60  ;;  %931 = vst.msk [vmem:[%s1599_s28 + $0x78] sm:$0xff] %vm681_vm4, %v1344_v61  ;;  %v672_v62 = vpop.f32.mrb[23].mxu1  ;;  %v907_v63 = vpop.f32.mrb[23].mxu0 }
 0x1de   : > { %696 = vst.msk [vmem:[%s1593_s25 + $0x70] sm:$0xff] %vm681_vm4, %v672_v62  ;;  %930 = vst.msk [vmem:[%s1599_s28 + $0x70] sm:$0xff] %vm681_vm4, %v907_v63 }
 0x1df PF: > { %s18_s24 = sadd.s32 1, %s1371_s24  }
 0x1e0   : > { %p15_p4 = scmp.ge.s32.totalorder %s18_s24, 6  }
 0x1e2   :  { %17 = sbr.rel (!%p15_p4) target bundleno = 1 (0x1), region = 94 }

</bundles_post_ra>
